<compile_context>
chip_gen: v6e
topology: v6e:2x2x1
jax: 0.10.0
libtpu: 0.0.40
codegen_flags: <defaults>
</compile_context>

<pallas_src>
import functools

import jax
import jax.numpy as jnp
from jax import lax
from jax.experimental import pallas as pl
from jax.experimental.pallas import tpu as pltpu

_LOG2 = 0.6931471805599453


def _shifted_softplus_of_neg(z):
    """shifted_softplus(-z) = softplus(-z) - log(2), numerically stable."""
    return jnp.maximum(-z, 0.0) + jnp.log1p(jnp.exp(-jnp.abs(z))) - _LOG2


def _round_up(x, m):
    return (x + m - 1) // m * m


# ---------------------------------------------------------------------------
# Kernel 1: encoder MLP per node tile + per-graph mean readout (segment mean)
# ---------------------------------------------------------------------------
def _encoder_kernel(x_ref, n2g_ref, nodew_ref,
                    w1_ref, b1_ref, w2_ref, b2_ref,
                    node_ref, graphp_ref):
    t = pl.program_id(1)
    ng_pad = graphp_ref.shape[0]
    tile_v = x_ref.shape[0]

    # encoder MLP (bf16 MXU operands, f32 accumulation / f32 VPU elementwise)
    h = jnp.dot(x_ref[...], w1_ref[...],
                preferred_element_type=jnp.float32) + b1_ref[...]
    h = jnp.maximum(h, 0.0)
    node = jnp.dot(h.astype(jnp.bfloat16), w2_ref[...],
                   preferred_element_type=jnp.float32) + b2_ref[...]
    node_ref[...] = node                      # written exactly once per tile

    # per-graph mean readout accumulated into this core's resident partial slab
    @pl.when(t == 0)
    def _init():
        graphp_ref[...] = jnp.zeros_like(graphp_ref)

    n2g = n2g_ref[...]                                        # (1, tile_v), -1 = pad
    gids = lax.broadcasted_iota(jnp.int32, (ng_pad, tile_v), 0)
    contrib = jnp.where(gids == n2g, nodew_ref[...], 0.0).astype(jnp.bfloat16)
    graphp_ref[...] += jnp.dot(contrib, node.astype(jnp.bfloat16),
                               preferred_element_type=jnp.float32)


# ---------------------------------------------------------------------------
# Kernel 2: graph-node mutual information (MLP_x / MLP_y + shifted softplus)
# ---------------------------------------------------------------------------
def _mi_kernel(graph_ref, node_ref, n2g_ref,
               xw1_ref, xb1_ref, xw2_ref, xb2_ref,
               yw1_ref, yb1_ref, yw2_ref, yb2_ref,
               part_ref,
               gxw2_ref, gxb_ref, accp_ref, accn_ref,
               *, n_graph):
    t = pl.program_id(1)
    last_t = pl.num_programs(1) - 1
    ng_pad = graph_ref.shape[0]
    tile_v = node_ref.shape[0]

    @pl.when(t == 0)
    def _init():
        # MLP_x(graph) computed once per core. The (linear) last layer of MLP_y
        # is folded into the graph side:
        #   score = gx @ (yh @ yw2 + yb2).T = (gx @ yw2.T) @ yh.T + gx @ yb2.T
        g_bf = graph_ref[...].astype(jnp.bfloat16)
        gh = jnp.dot(g_bf, xw1_ref[...],
                     preferred_element_type=jnp.float32) + xb1_ref[...]
        gh = jnp.maximum(gh, 0.0)
        gx = jnp.dot(gh.astype(jnp.bfloat16), xw2_ref[...],
                     preferred_element_type=jnp.float32) + xb2_ref[...]
        gxw2_ref[...] = lax.dot_general(
            gx.astype(jnp.bfloat16), yw2_ref[...],
            (((1,), (1,)), ((), ())),
            preferred_element_type=jnp.float32).astype(jnp.bfloat16)
        gxb_ref[...] = jnp.sum(gx * yb2_ref[...], axis=1, keepdims=True)
        accp_ref[...] = jnp.zeros_like(accp_ref)
        accn_ref[...] = jnp.zeros_like(accn_ref)

    # hidden layer of MLP_y for this node tile (the only per-tile d x d matmul)
    node_bf = node_ref[...].astype(jnp.bfloat16)
    yh = jnp.dot(node_bf, yw1_ref[...],
                 preferred_element_type=jnp.float32) + yb1_ref[...]
    yh = jnp.maximum(yh, 0.0)

    # score = gxw2 @ yh.T + gxb  (no explicit transpose)
    score = lax.dot_general(gxw2_ref[...], yh.astype(jnp.bfloat16),
                            (((1,), (1,)), ((), ())),
                            preferred_element_type=jnp.float32) + gxb_ref[...]

    n2g = n2g_ref[...]                                        # (1, tile_v), -1 = pad
    gids = lax.broadcasted_iota(jnp.int32, (ng_pad, tile_v), 0)
    pos = gids == n2g
    neg = (gids < n_graph) & (n2g >= 0) & jnp.logical_not(pos)

    sp_neg = _shifted_softplus_of_neg(score)   # shifted_softplus(-score)
    sp_pos = score + sp_neg                    # shifted_softplus(score), shared exp

    # elementwise VMEM accumulation: no per-tile reduce, one reduce at the end
    accp_ref[...] += jnp.where(pos, sp_neg, 0.0)
    accn_ref[...] += jnp.where(neg, sp_pos, 0.0)

    @pl.when(t == last_t)
    def _finalize():
        pos_s = jnp.sum(accp_ref[...])
        neg_s = jnp.sum(accn_ref[...])
        lanes = lax.broadcasted_iota(jnp.int32, part_ref.shape, 1)
        part_ref[...] = jnp.where(lanes == 0, pos_s,
                                  jnp.where(lanes == 1, neg_s, 0.0))


# ---------------------------------------------------------------------------
# Wrapper
# ---------------------------------------------------------------------------
def infograph_pallas(x, node2graph, n_graph, params, *, tile_v=1024, n_cores=2):
    """Returns (node_feature (V,d), graph_feature (n_graph,d), mutual_information)."""
    V, in_dim = x.shape
    d = params["w2"].shape[1]

    # adaptive tile: big by default, shrunk for tiny inputs to limit padding
    tile_v = max(128, _round_up(min(tile_v, _round_up(V, 128)), 128))
    ng_pad = _round_up(max(n_graph, 16), 16)
    V_pad = _round_up(max(V, n_cores * tile_v), n_cores * tile_v)
    T = V_pad // (n_cores * tile_v)                 # node tiles per core

    bf = lambda a: a.astype(jnp.bfloat16)
    f32 = lambda a: a.astype(jnp.float32)

    # node-axis padding: padded nodes carry graph id -1 and readout weight 0
    x_p = jnp.zeros((V_pad, in_dim), jnp.bfloat16).at[:V].set(bf(x))
    n2g = node2graph.astype(jnp.int32)
    n2g_p = jnp.full((1, V_pad), -1, jnp.int32).at[0, :V].set(n2g)
    counts = jnp.zeros((n_graph,), jnp.float32).at[n2g].add(1.0)
    node_w = jnp.zeros((1, V_pad), jnp.float32).at[0, :V].set(1.0 / counts[n2g])

    res = lambda shape: pl.BlockSpec(shape, lambda c, t: (0, 0))        # resident
    row = pl.BlockSpec((1, tile_v), lambda c, t: (0, c * T + t))        # per-tile row

    cparams = pltpu.CompilerParams(
        dimension_semantics=("parallel", "arbitrary"),  # core split on v7x; serial on v5e/v6e
        vmem_limit_bytes=32 * 1024 * 1024)              # v5e default is only 16 MiB

    # -------------------- kernel 1: encoder + mean readout --------------------
    enc_cost = pl.CostEstimate(
        flops=int(2 * V_pad * in_dim * d + 2 * V_pad * d * d + 2 * ng_pad * V_pad * d),
        transcendentals=0,
        bytes_accessed=int(2 * V_pad * in_dim + 4 * V_pad * d + 8 * V_pad
                           + 4 * n_cores * ng_pad * d
                           + 2 * (in_dim * d + d * d) + 8 * d))

    node_p, graph_partial = pl.pallas_call(
        _encoder_kernel,
        grid=(n_cores, T),
        in_specs=[
            pl.BlockSpec((tile_v, in_dim), lambda c, t: (c * T + t, 0)),  # x tile (bf16)
            row,                                                          # node2graph
            row,                                                          # 1/|graph| weights
            res((in_dim, d)), res((1, d)),                                # w1, b1
            res((d, d)), res((1, d)),                                     # w2, b2
        ],
        out_specs=(
            pl.BlockSpec((tile_v, d), lambda c, t: (c * T + t, 0)),       # node_feature
            pl.BlockSpec((ng_pad, d), lambda c, t: (c, 0)),               # per-core graph partial
        ),
        out_shape=(
            jax.ShapeDtypeStruct((V_pad, d), jnp.float32),
            jax.ShapeDtypeStruct((n_cores * ng_pad, d), jnp.float32),
        ),
        compiler_params=cparams,
        cost_estimate=enc_cost,
    )(x_p, n2g_p, node_w,
      bf(params["w1"]), f32(params["b1"]), bf(params["w2"]), f32(params["b2"]))

    # tiny cross-core combine (2 x ng_pad x d)
    graph_pad = graph_partial.reshape(n_cores, ng_pad, d).sum(axis=0)

    # -------------------- kernel 2: mutual information ------------------------
    mi_cost = pl.CostEstimate(
        flops=int(2 * V_pad * d * d + 2 * ng_pad * V_pad * d
                  + n_cores * 6 * ng_pad * d * d),
        transcendentals=int(2 * ng_pad * V_pad),
        bytes_accessed=int(4 * V_pad * d + 4 * V_pad + 4 * ng_pad * d
                           + 8 * d * d + 8 * d + 4 * n_cores * 8 * 128))

    part = pl.pallas_call(
        functools.partial(_mi_kernel, n_graph=n_graph),
        grid=(n_cores, T),
        in_specs=[
            res((ng_pad, d)),                                             # graph_feature (resident)
            pl.BlockSpec((tile_v, d), lambda c, t: (c * T + t, 0)),       # node_feature tile
            row,                                                          # node2graph
            res((d, d)), res((1, d)), res((d, d)), res((1, d)),           # x_mlp
            res((d, d)), res((1, d)), res((d, d)), res((1, d)),           # y_mlp
        ],
        out_specs=pl.BlockSpec((8, 128), lambda c, t: (c, 0)),            # per-core (pos,neg) sums
        out_shape=jax.ShapeDtypeStruct((n_cores * 8, 128), jnp.float32),
        scratch_shapes=[
            pltpu.VMEM((ng_pad, d), jnp.bfloat16),      # gx @ yw2.T
            pltpu.VMEM((ng_pad, 1), jnp.float32),       # gx @ yb2.T
            pltpu.VMEM((ng_pad, tile_v), jnp.float32),  # pos partial accumulator
            pltpu.VMEM((ng_pad, tile_v), jnp.float32),  # neg partial accumulator
        ],
        compiler_params=cparams,
        cost_estimate=mi_cost,
    )(graph_pad, node_p, n2g_p,
      bf(params["xw1"]), f32(params["xb1"]), bf(params["xw2"]), f32(params["xb2"]),
      bf(params["yw1"]), f32(params["yb1"]), bf(params["yw2"]), f32(params["yb2"]))

    part = part.reshape(n_cores, 8, 128)
    pos_sum = part[:, 0, 0].sum()
    neg_sum = part[:, 0, 1].sum()
    n_pos = float(V)
    n_neg = float(max(n_graph - 1, 1) * V)   # guard n_graph==1 (no negative pairs)
    mi = -(pos_sum / n_pos) - (neg_sum / n_neg)
    return node_p[:V], graph_pad[:n_graph], mi


# ---------------------------------------------------------------------------
# InfoGraph forward (separate_model=False, loss_weight=1)
# ---------------------------------------------------------------------------
def infograph_forward(x, node2graph, n_graph, params, all_loss=None, metric=None,
                      loss_weight=1.0):
    node_feat, graph_feat, mi = infograph_pallas(x, node2graph, n_graph, params)
    output = {"node_feature": node_feat, "graph_feature": graph_feat}
    if all_loss is not None:
        # separate_model=False: unsupervised encoder == supervised encoder
        if metric is not None:
            metric["graph-node mutual information"] = mi
        if loss_weight > 0:
            all_loss = all_loss - mi * loss_weight
    return output, all_loss, metric


# TODO(synk): the wrapped `model` in torchdrug is an arbitrary GNN; a 2-layer
# MLP encoder + per-graph mean readout is used here as a deterministic stand-in.


# ---------------------------------------------------------------------------
# pure-JAX f32 reference (loose correctness check against bf16 MXU math)
# ---------------------------------------------------------------------------
def _reference(x, node2graph, n_graph, params):
    h = jnp.maximum(x @ params["w1"] + params["b1"], 0.0)
    node = h @ params["w2"] + params["b2"]
    onehot = jax.nn.one_hot(node2graph, n_graph, dtype=jnp.float32)     # (V, n_graph)
    counts = onehot.sum(0)
    graph = (onehot / counts).T @ node                                  # mean readout

    gh = jnp.maximum(graph @ params["xw1"] + params["xb1"], 0.0)
    gx = gh @ params["xw2"] + params["xb2"]
    yh = jnp.maximum(node @ params["yw1"] + params["yb1"], 0.0)
    y = yh @ params["yw2"] + params["yb2"]
    score = gx @ y.T                                                    # (n_graph, V)

    pos = onehot.T.astype(bool)
    ssp = lambda z: jax.nn.softplus(z) - jnp.log(2.0)
    pos_term = jnp.sum(jnp.where(pos, ssp(-score), 0.0)) / jnp.sum(pos)
    neg_term = jnp.sum(jnp.where(~pos, ssp(score), 0.0)) / jnp.sum(~pos)
    return node, graph, -pos_term - neg_term


if __name__ == "__main__":
    key = jax.random.PRNGKey(0)
    n_graph, nodes_per_graph = 2, 128
    V = n_graph * nodes_per_graph           # 256 nodes
    in_dim, d = 128, 128                    # lane-dense feature dims

    ks = jax.random.split(key, 13)
    s = 0.1
    params = {
        # encoder ("model") params
        "w1": s * jax.random.normal(ks[0], (in_dim, d), jnp.float32),
        "b1": s * jax.random.normal(ks[1], (1, d), jnp.float32),
        "w2": s * jax.random.normal(ks[2], (d, d), jnp.float32),
        "b2": s * jax.random.normal(ks[3], (1, d), jnp.float32),
        # MutualInformation x_mlp (graph side), 2 layers
        "xw1": s * jax.random.normal(ks[4], (d, d), jnp.float32),
        "xb1": s * jax.random.normal(ks[5], (1, d), jnp.float32),
        "xw2": s * jax.random.normal(ks[6], (d, d), jnp.float32),
        "xb2": s * jax.random.normal(ks[7], (1, d), jnp.float32),
        # MutualInformation y_mlp (node side), 2 layers
        "yw1": s * jax.random.normal(ks[8], (d, d), jnp.float32),
        "yb1": s * jax.random.normal(ks[9], (1, d), jnp.float32),
        "yw2": s * jax.random.normal(ks[10], (d, d), jnp.float32),
        "yb2": s * jax.random.normal(ks[11], (1, d), jnp.float32),
    }
    node2graph = jnp.repeat(jnp.arange(n_graph, dtype=jnp.int32), nodes_per_graph)
    x = jax.random.normal(ks[12], (V, in_dim), jnp.float32)

    all_loss = jnp.float32(0.0)
    metric = {}
    output, all_loss, metric = infograph_forward(
        x, node2graph, n_graph, params, all_loss=all_loss, metric=metric,
        loss_weight=1.0)
    jax.block_until_ready((output["node_feature"], output["graph_feature"],
                           all_loss, metric["graph-node mutual information"]))

    assert output["node_feature"].shape == (V, d)
    assert output["graph_feature"].shape == (n_graph, d)
    assert all_loss.shape == ()

    # loose check vs pure-JAX f32 reference (kernel uses bf16 MXU operands)
    node_exp, graph_exp, mi_exp = _reference(x, node2graph, n_graph, params)
    mi = metric["graph-node mutual information"]
    assert bool(jnp.allclose(output["node_feature"], node_exp, rtol=0.05, atol=0.05))
    assert bool(jnp.allclose(output["graph_feature"], graph_exp, rtol=0.05, atol=0.05))
    assert bool(jnp.allclose(mi, mi_exp, rtol=0.1, atol=0.15))

    print("KERNEL_OK")
</pallas_src>

<mosaic_0001>
module attributes {stable_mosaic.version = 11 : i64} {
  func.func @_encoder_kernel(%arg0: i32, %arg1: i32, %arg2: memref<256x128xbf16, #tpu.memory_space<vmem>>, %arg3: memref<1x256xi32, #tpu.memory_space<vmem>>, %arg4: memref<1x256xf32, #tpu.memory_space<vmem>>, %arg5: memref<128x128xbf16, #tpu.memory_space<vmem>>, %arg6: memref<1x128xf32, #tpu.memory_space<vmem>>, %arg7: memref<128x128xbf16, #tpu.memory_space<vmem>>, %arg8: memref<1x128xf32, #tpu.memory_space<vmem>>, %arg9: memref<256x128xf32, #tpu.memory_space<vmem>>, %arg10: memref<16x128xf32, #tpu.memory_space<vmem>>) attributes {dimension_semantics = [#tpu.dimension_semantics<parallel>, #tpu.dimension_semantics<arbitrary>], iteration_bounds = array<i64: 2, 1>, scalar_prefetch = 0 : i64, scratch_operands = 0 : i64, tpu.core_type = #tpu.core_type<tc>, window_params = [{transform_indices = @transform_0, window_bounds = array<i64: 256, 128>}, {transform_indices = @transform_1, window_bounds = array<i64: 1, 256>}, {transform_indices = @transform_2, window_bounds = array<i64: 1, 256>}, {pipeline_mode = #tpu.pipeline_mode<synchronous>, transform_indices = @transform_3, window_bounds = array<i64: 128, 128>}, {pipeline_mode = #tpu.pipeline_mode<synchronous>, transform_indices = @transform_4, window_bounds = array<i64: 1, 128>}, {pipeline_mode = #tpu.pipeline_mode<synchronous>, transform_indices = @transform_5, window_bounds = array<i64: 128, 128>}, {pipeline_mode = #tpu.pipeline_mode<synchronous>, transform_indices = @transform_6, window_bounds = array<i64: 1, 128>}, {transform_indices = @transform_7, window_bounds = array<i64: 256, 128>}, {transform_indices = @transform_8, window_bounds = array<i64: 16, 128>}]} {
    %c0 = arith.constant 0 : index
    %c0_0 = arith.constant 0 : index
    %0 = vector.load %arg2[%c0, %c0_0] : memref<256x128xbf16, #tpu.memory_space<vmem>>, vector<256x128xbf16>
    %c0_1 = arith.constant 0 : index
    %c0_2 = arith.constant 0 : index
    %1 = vector.load %arg5[%c0_1, %c0_2] : memref<128x128xbf16, #tpu.memory_space<vmem>>, vector<128x128xbf16>
    %cst = arith.constant dense<0.000000e+00> : vector<256x128xf32>
    %2 = tpu.matmul %0, %1, %cst {dimension_numbers = #tpu.dot_dimension_numbers<[1], [0], [0], [1], [0, 0, 1, 1], [], []>} : vector<256x128xbf16>, vector<128x128xbf16>, vector<256x128xf32> -> vector<256x128xf32>
    %c0_3 = arith.constant 0 : index
    %c0_4 = arith.constant 0 : index
    %3 = vector.load %arg6[%c0_3, %c0_4] : memref<1x128xf32, #tpu.memory_space<vmem>>, vector<1x128xf32>
    %4 = vector.broadcast %3 : vector<1x128xf32> to vector<256x128xf32>
    %5 = arith.addf %2, %4 : vector<256x128xf32>
    %cst_5 = arith.constant 0.000000e+00 : f32
    %6 = vector.broadcast %cst_5 : f32 to vector<256x128xf32>
    %7 = arith.maximumf %5, %6 : vector<256x128xf32>
    %8 = arith.truncf %7 : vector<256x128xf32> to vector<256x128xbf16>
    %c0_6 = arith.constant 0 : index
    %c0_7 = arith.constant 0 : index
    %9 = vector.load %arg7[%c0_6, %c0_7] : memref<128x128xbf16, #tpu.memory_space<vmem>>, vector<128x128xbf16>
    %cst_8 = arith.constant dense<0.000000e+00> : vector<256x128xf32>
    %10 = tpu.matmul %8, %9, %cst_8 {dimension_numbers = #tpu.dot_dimension_numbers<[1], [0], [0], [1], [0, 0, 1, 1], [], []>} : vector<256x128xbf16>, vector<128x128xbf16>, vector<256x128xf32> -> vector<256x128xf32>
    %c0_9 = arith.constant 0 : index
    %c0_10 = arith.constant 0 : index
    %11 = vector.load %arg8[%c0_9, %c0_10] : memref<1x128xf32, #tpu.memory_space<vmem>>, vector<1x128xf32>
    %12 = vector.broadcast %11 : vector<1x128xf32> to vector<256x128xf32>
    %13 = arith.addf %10, %12 : vector<256x128xf32>
    %c0_11 = arith.constant 0 : index
    %c0_12 = arith.constant 0 : index
    %14 = vector.load %arg9[%c0_11, %c0_12] : memref<256x128xf32, #tpu.memory_space<vmem>>, vector<256x128xf32>
    tpu.vector_store %arg9[%c0_11, %c0_12], %13 {strides = array<i32>} : memref<256x128xf32, #tpu.memory_space<vmem>>, vector<256x128xf32>,
    %c0_i32 = arith.constant 0 : i32
    %15 = arith.cmpi eq, %arg1, %c0_i32 : i32
    %16 = arith.extui %15 : i1 to i32
    %c0_i32_13 = arith.constant 0 : i32
    %17 = arith.cmpi ne, %16, %c0_i32_13 : i32
    scf.if %17 {
      %cst_24 = arith.constant 0.000000e+00 : f32
      %33 = vector.broadcast %cst_24 : f32 to vector<16x128xf32>
      %c0_25 = arith.constant 0 : index
      %c0_26 = arith.constant 0 : index
      %34 = vector.load %arg10[%c0_25, %c0_26] : memref<16x128xf32, #tpu.memory_space<vmem>>, vector<16x128xf32>
      tpu.vector_store %arg10[%c0_25, %c0_26], %33 {strides = array<i32>} : memref<16x128xf32, #tpu.memory_space<vmem>>, vector<16x128xf32>,
    } else {
    }
    %c0_14 = arith.constant 0 : index
    %c0_15 = arith.constant 0 : index
    %18 = vector.load %arg3[%c0_14, %c0_15] : memref<1x256xi32, #tpu.memory_space<vmem>>, vector<1x256xi32>
    %19 = tpu.iota {dimensions = array<i32: 0>} : vector<16x256xi32>
    %20 = vector.broadcast %18 : vector<1x256xi32> to vector<16x256xi32>
    %21 = arith.cmpi eq, %19, %20 : vector<16x256xi32>
    %c0_16 = arith.constant 0 : index
    %c0_17 = arith.constant 0 : index
    %22 = vector.load %arg4[%c0_16, %c0_17] : memref<1x256xf32, #tpu.memory_space<vmem>>, vector<1x256xf32>
    %cst_18 = arith.constant 0.000000e+00 : f32
    %23 = vector.shape_cast %22 : vector<1x256xf32> to vector<1x256xf32>
    %24 = vector.broadcast %23 : vector<1x256xf32> to vector<16x256xf32>
    %25 = vector.broadcast %cst_18 : f32 to vector<16x256xf32>
    %26 = arith.select %21, %24, %25 : vector<16x256xi1>, vector<16x256xf32>
    %27 = arith.truncf %26 : vector<16x256xf32> to vector<16x256xbf16>
    %c0_19 = arith.constant 0 : index
    %c0_20 = arith.constant 0 : index
    %28 = vector.load %arg10[%c0_19, %c0_20] : memref<16x128xf32, #tpu.memory_space<vmem>>, vector<16x128xf32>
    %29 = arith.truncf %13 : vector<256x128xf32> to vector<256x128xbf16>
    %cst_21 = arith.constant dense<0.000000e+00> : vector<16x128xf32>
    %30 = tpu.matmul %27, %29, %cst_21 {dimension_numbers = #tpu.dot_dimension_numbers<[1], [0], [0], [1], [0, 0, 1, 1], [], []>} : vector<16x256xbf16>, vector<256x128xbf16>, vector<16x128xf32> -> vector<16x128xf32>
    %31 = arith.addf %28, %30 : vector<16x128xf32>
    %c0_22 = arith.constant 0 : index
    %c0_23 = arith.constant 0 : index
    %32 = vector.load %arg10[%c0_22, %c0_23] : memref<16x128xf32, #tpu.memory_space<vmem>>, vector<16x128xf32>
    tpu.vector_store %arg10[%c0_22, %c0_23], %31 {strides = array<i32>} : memref<16x128xf32, #tpu.memory_space<vmem>>, vector<16x128xf32>,
    return
  }
  func.func @transform_0(%arg0: i32, %arg1: i32) -> (i32, i32) {
    %c1_i32 = arith.constant 1 : i32
    %0 = arith.muli %arg0, %c1_i32 : i32
    %1 = arith.addi %0, %arg1 : i32
    %c0_i32 = arith.constant 0 : i32
    %c0_i32_0 = arith.constant 0 : i32
    return %1, %c0_i32 : i32, i32
  }
  func.func @transform_1(%arg0: i32, %arg1: i32) -> (i32, i32) {
    %c1_i32 = arith.constant 1 : i32
    %0 = arith.muli %arg0, %c1_i32 : i32
    %1 = arith.addi %0, %arg1 : i32
    %c0_i32 = arith.constant 0 : i32
    %c0_i32_0 = arith.constant 0 : i32
    return %c0_i32, %1 : i32, i32
  }
  func.func @transform_2(%arg0: i32, %arg1: i32) -> (i32, i32) {
    %c1_i32 = arith.constant 1 : i32
    %0 = arith.muli %arg0, %c1_i32 : i32
    %1 = arith.addi %0, %arg1 : i32
    %c0_i32 = arith.constant 0 : i32
    %c0_i32_0 = arith.constant 0 : i32
    return %c0_i32, %1 : i32, i32
  }
  func.func @transform_3(%arg0: i32, %arg1: i32) -> (i32, i32) {
    %c0_i32 = arith.constant 0 : i32
    %c0_i32_0 = arith.constant 0 : i32
    %c0_i32_1 = arith.constant 0 : i32
    return %c0_i32, %c0_i32_0 : i32, i32
  }
  func.func @transform_4(%arg0: i32, %arg1: i32) -> (i32, i32) {
    %c0_i32 = arith.constant 0 : i32
    %c0_i32_0 = arith.constant 0 : i32
    %c0_i32_1 = arith.constant 0 : i32
    return %c0_i32, %c0_i32_0 : i32, i32
  }
  func.func @transform_5(%arg0: i32, %arg1: i32) -> (i32, i32) {
    %c0_i32 = arith.constant 0 : i32
    %c0_i32_0 = arith.constant 0 : i32
    %c0_i32_1 = arith.constant 0 : i32
    return %c0_i32, %c0_i32_0 : i32, i32
  }
  func.func @transform_6(%arg0: i32, %arg1: i32) -> (i32, i32) {
    %c0_i32 = arith.constant 0 : i32
    %c0_i32_0 = arith.constant 0 : i32
    %c0_i32_1 = arith.constant 0 : i32
    return %c0_i32, %c0_i32_0 : i32, i32
  }
  func.func @transform_7(%arg0: i32, %arg1: i32) -> (i32, i32) {
    %c1_i32 = arith.constant 1 : i32
    %0 = arith.muli %arg0, %c1_i32 : i32
    %1 = arith.addi %0, %arg1 : i32
    %c0_i32 = arith.constant 0 : i32
    %c0_i32_0 = arith.constant 0 : i32
    return %1, %c0_i32 : i32, i32
  }
  func.func @transform_8(%arg0: i32, %arg1: i32) -> (i32, i32) {
    %c0_i32 = arith.constant 0 : i32
    %c0_i32_0 = arith.constant 0 : i32
    return %arg0, %c0_i32 : i32, i32
  }
}

</mosaic_0001>

<bundles_post_ra>
// kernel: tpu_custom_call.1
= control target key start
LH: loop header
LB: loop body
LE: loop exit
PB: predicated region body
PF: predicated region fallthrough
CT: control target
= control target key end

     0   :  { %s2647_s0 = inlined_call_operand.hbm [shape: bf16[512,128], index: 0, kind: input, shape index: {}]   ;;  %s2648_s1 = inlined_call_operand.hbm [shape: s32[1,512], index: 1, kind: input, shape index: {}]   ;;  %s2649_s2 = inlined_call_operand.hbm [shape: f32[1,512], index: 2, kind: input, shape index: {}]   ;;  %s2650_s3 = inlined_call_operand.hbm [shape: bf16[128,128], index: 3, kind: input, shape index: {}]   ;;  %s2651_s4 = inlined_call_operand.vmem [shape: f32[1,128], index: 4, kind: input, shape index: {}]   ;;  %s2652_s5 = inlined_call_operand.hbm [shape: bf16[128,128], index: 5, kind: input, shape index: {}]   ;;  %s2653_s6 = inlined_call_operand.vmem [shape: f32[1,128], index: 6, kind: input, shape index: {}]   ;;  %s2654_s7 = inlined_call_operand.hbm [shape: f32[512,128], index: 7, kind: output, shape index: {0}]   ;;  %s2655_s8 = inlined_call_operand.hbm [shape: f32[32,128], index: 8, kind: output, shape index: {1}]  }
   0x1   :  { %2672 = sst [smem:[#allocation24_spill]] %s2648_s1 }
   0x2   :  { %2673 = sst [smem:[#allocation25_spill]] %s2649_s2 }
   0x3   :  { %2674 = sst [smem:[#allocation26_spill]] %s2650_s3 }
   0x4   :  { %2675 = sst [smem:[#allocation27_spill]] %s2654_s7 }
   0x5   :  { %2676 = sst [smem:[#allocation28_spill]] %s2655_s8 }
   0x6   :  { %14 = vsyncpa [#allocation3], 0 }
   0x7   :  { %16 = vsyncpa [#allocation3 + $0x1], 0 }
   0x8   :  { %17 = vsyncpa [#allocation6], 0 }
   0x9   :  { %19 = vsyncpa [#allocation6 + $0x1], 0 }
   0xa   :  { %20 = vsyncpa [#allocation9], 0 }
   0xb   :  { %21 = vsyncpa [#allocation4], 0 }
   0xc   :  { %23 = vsyncpa [#allocation4 + $0x1], 0 }
   0xd   :  { %24 = vsyncpa [#allocation13], 0 }
   0xe   :  { %26 = vsyncpa [#allocation13 + $0x1], 0  ;;  %s2149_s27 = smov 0   ;;  %s2151_s28 = smov 0  }
   0xf   :  { %s2153_s29 = smov 0   ;;  %s2155_s30 = smov 0  }
  0x10   :  { %s2157_s9 = smov 0   ;;  %s2159_s10 = smov 0  }
  0x11 LB: > { %2677 = sst [smem:[#allocation19_spill]] %s2071_s27  ;;  %s2180_s11 = sadd.s32 4294967295, %s2091_s10   ;;  %s2091_s10 = sphi %s2159_s10, %s32_s10   ;;  %s2087_s9 = sphi %s2157_s9, %s2716_s9   ;;  %s2083_s30 = sphi %s2155_s30, %s2715_s30   ;;  %s2079_s29 = sphi %s2153_s29, %s2714_s29   ;;  %s2075_s28 = sphi %s2151_s28, %s2713_s28   ;;  %s2071_s27 = sphi %s2149_s27, %s2712_s27  }
  0x12   : > { %s1461_s12 = sadd.s32 4294967294, %s2091_s10   ;;  %p66_p0 = scmp.ne.s32.totalorder %s2075_s28, %s2071_s27 }
  0x13   : > { %p2656_p1 = scmp.eq.s32.totalorder %s2180_s11, 0  ;;  %p238_p3 = scmp.eq.s32.totalorder %s1461_s12, 1 }
  0x14   : > { %p1462_p5 = scmp.ge.s32.totalorder %s2091_s10, 1  ;;  %p271_p7 = scmp.lt.s32.totalorder %s2091_s10, 3 }
  0x15   : > { %p2189_p4 = por %p2656_p1, %p66_p0  ;;  %p2194_p6 = por %p238_p3, %p66_p0 }
  0x16   : > { %p2199_p8 = pnand %p1462_p5, %p271_p7  ;;  %s2093_s16 = smov [#allocation8]  }
  0x17   : > { %s2679_s14 = scalar_select %p2194_p6, 1, 0 }
  0x18   : > { %s283_s17 = sshll.u32 %s2093_s16, 4  ;;  %p1720_p9 = pneg %p2199_p8  ;;  %s284_s17 = int_to_ptr.vmem [resolvable:$true] %s283_s17 }
  0x19   : > { %2680 = sst [smem:[#allocation20_spill]] %s2679_s14  ;;  %s44_s19 = sadd.s32 1, %s2087_s9 }
  0x1a   : > { %p2208_p11 = pnand %p1720_p9, %p2656_p1  ;;  %s1848_s20 = scalar_lea.vmem %s284_s17, 1024 }
  0x1b   : > { %p1849_p13 = scmp.ne.s32.totalorder %s284_s17, %s1848_s20  ;;  %p1856_p5 = scmp.lt.s32.totalorder %s284_s17, %s284_s17 }
  0x1c   : > { %p2668_p12 = pneg %p2208_p11  ;;  %p1857_p7 = scmp.lt.s32.totalorder %s1848_s20, %s1848_s20 }
  0x1e   : > { %p1851_p0 = pnand %p1849_p13, %p2668_p12  ;;  %p1858_p2 = por %p1857_p7, %p1856_p5 }
  0x20   : > { %p1852_p3 = pneg %p1851_p0 }
  0x22   : > { %p1859_p10 = pnand %p1858_p2, %p1852_p3 }
  0x24   : > { %1862 = shalt.err (!%p1859_p10)
}
  0x25   : > { %s2657_s21 = smov 64   ;;  %s2659_s22 = smov 4  }
  0x26   : > { %s2683_s3 = sld [smem:[#allocation26_spill]]  ;;  %p46_p2 = scmp.ge.s32.totalorder %s44_s19, 2 }
  0x27   : > { %s53_s25 = sadd.s32 1, %s2079_s29  ;;  %p60_p9 = scmp.ne.s32.totalorder %s2079_s29, %s2075_s28 }
  0x28   : > { %p61_p10 = scmp.eq.s32.totalorder %s2091_s10, 0  ;;  %s2718_s19 = smov (%p46_p2, %s44_s19), 0 }
  0x29   : > { %2684 = sst [smem:[#allocation21_spill]] %s2718_s19  ;;  %p2685_p0 = scmp.eq.s32.totalorder %s2180_s11, 1 }
  0x2a   : > { %p62_p13 = por %p61_p10, %p60_p9  ;;  %s50_s12 = ssub.s32 %s2087_s9, %s2718_s19 }
  0x2b   : > { %p2234_p3 = por %p2685_p0, %p60_p9  ;;  %p1746_p5 = scmp.lt.s32.totalorder %s2091_s10, 2 }
  0x2c   : > { %1723 = dma.hbm_to_vmem [thread:$0]  (!%p2208_p11), %s2683_s3, 1024, %s284_s17, [#allocation9], %s2657_s21, %s2657_s21, %s2659_s22  }
  0x2d   : > { %s2686_s26 = scalar_select %p2234_p3, 1, 0 }
  0x2e   : > { %p51_p7 = scmp.eq.s32.totalorder %s50_s12, 0  ;;  %s2242_s16 = sand.u32 1, %s2079_s29  }
  0x2f   : > { %2687 = sst [smem:[#allocation22_spill]] %s2686_s26  ;;  %p2244_p1 = pnand %p1746_p5, %p62_p13 }
  0x30   : > { %s338_s20 = sand.u32 1, %s2091_s10   ;;  %s2671_s24 = sshll.u32 %s2242_s16, 1 }
  0x31   : > { %s2250_s23 = scalar_select %p51_p7, %s2079_s29, %s53_s25  }
  0x32   : > { %s1532_s21 = sshll.u32 %s2087_s9, 5  ;;  %s2690_s1 = sld [smem:[#allocation24_spill]] }
  0x33   : > { %2689 = sst [smem:[#allocation23_spill]] %s2250_s23  ;;  %s342_s12 = scalar_lea.vmem [#allocation5], %s2671_s24 }
  0x34   : > { %s351_s14 = sshll.u32 %s342_s12, 4  ;;  %s2691_s2 = sld [smem:[#allocation25_spill]]  ;;  %s352_s14 = int_to_ptr.vmem [resolvable:$true] %s351_s14 }
  0x35   : > { %s2264_s26 = scalar_lea.sflag [#allocation6], %s338_s20  ;;  %p2669_p2 = pneg %p2244_p1 }
  0x36   : > { %s1876_s25 = scalar_lea.vmem %s352_s14, 32  ;;  %s2096_s3 = smov [#allocation5]  }
  0x37   : > { %p1877_p9 = scmp.ne.s32.totalorder %s352_s14, %s1876_s25  ;;  %s1881_s22 = sshll.u32 %s2096_s3, 4  ;;  %s1882_s22 = int_to_ptr.vmem [resolvable:$false] %s1881_s22 }
  0x38   : > { %s349_s19 = scalar_lea.hbm %s2690_s1, %s1532_s21  ;;  %s1883_s12 = scalar_lea.vmem %s1882_s22, 64 }
  0x39   : > { %p1879_p10 = pnand %p1877_p9, %p2669_p2  ;;  %p1884_p0 = scmp.lt.s32.totalorder %s352_s14, %s1882_s22 }
  0x3a   : > { %s2262_s7 = scalar_lea.hbm %s2691_s2, %s1532_s21  ;;  %p1885_p5 = scmp.lt.s32.totalorder %s1883_s12, %s1876_s25 }
  0x3b   : > { %p1880_p13 = pneg %p1879_p10 }
  0x3c   : > { %p1886_p7 = por %p1885_p5, %p1884_p0 }
  0x3e   : > { %p1887_p12 = pnand %p1886_p7, %p1880_p13 }
  0x40   : > { %1890 = shalt.err (!%p1887_p12)
}
  0x41   : > { %1733 = dma.hbm_to_vmem [thread:$0]  (!%p2244_p1), %s349_s19, 32, %s352_s14, %s2264_s26  }
  0x42   : > { %s2097_s8 = smov [#allocation10]   ;;  %s1466_s21 = sshll.u32 %s2242_s16, 7 }
  0x43   : > { %s299_s27 = sshll.u32 %s2097_s8, 4  ;;  %p2692_p10 = pneg %p2208_p11  ;;  %s300_s27 = int_to_ptr.vmem [resolvable:$true] %s299_s27 }
  0x44   : > { %s1902_s20 = scalar_lea.vmem %s300_s27, 1024  ;;  %p1910_p3 = scmp.lt.s32.totalorder %s300_s27, %s300_s27 }
  0x45   : > { %p1903_p9 = scmp.ne.s32.totalorder %s300_s27, %s1902_s20  ;;  %p1911_p0 = scmp.lt.s32.totalorder %s1902_s20, %s1902_s20 }
  0x47   : > { %p1905_p2 = pnand %p1903_p9, %p2692_p10  ;;  %p1912_p13 = por %p1911_p0, %p1910_p3 }
  0x49   : > { %p1906_p6 = pneg %p1905_p2 }
  0x4b   : > { %p1913_p12 = pnand %p1912_p13, %p1906_p6 }
  0x4d   : > { %1916 = shalt.err (!%p1913_p12)
}
  0x4e   : > { %s2693_s25 = smov 4   ;;  %s2694_s3 = smov 64  }
  0x4f   : > { %1726 = dma.hbm_to_vmem [thread:$0]  (!%p2208_p11), %s2652_s5, 1024, %s300_s27, [#allocation9], %s2694_s3, %s2694_s3, %s2693_s25  }
  0x50   : > { %s1531_s22 = sshll.u32 %s2087_s9, 11  ;;  %s320_s12 = scalar_lea.vmem [#allocation2], %s1466_s21 }
  0x51   : > { %s328_s8 = sshll.u32 %s320_s12, 4  ;;  %s327_s1 = scalar_lea.hbm %s2647_s0, %s1531_s22  ;;  %s329_s8 = int_to_ptr.vmem [resolvable:$true] %s328_s8 }
  0x52   : > { %s317_s2 = scalar_lea.sflag [#allocation3], %s2242_s16  ;;  %s1930_s18 = scalar_lea.vmem %s329_s8, 2048 }
  0x53   : > { %p1931_p6 = scmp.ne.s32.totalorder %s329_s8, %s1930_s18  ;;  %p2695_p3 = pneg %p2244_p1 }
  0x54   : > { %s2098_s14 = smov [#allocation2]  }
  0x55   : > { %p1933_p2 = pnand %p1931_p6, %p2695_p3  ;;  %s1935_s19 = sshll.u32 %s2098_s14, 4  ;;  %s1936_s19 = int_to_ptr.vmem [resolvable:$false] %s1935_s19 }
  0x56   : > { %s1937_s23 = scalar_lea.vmem %s1936_s19, 4096  ;;  %p1938_p11 = scmp.lt.s32.totalorder %s329_s8, %s1936_s19 }
  0x57   : > { %p1934_p5 = pneg %p1933_p2  ;;  %p1939_p7 = scmp.lt.s32.totalorder %s1937_s23, %s1930_s18 }
  0x59   : > { %p1940_p9 = por %p1939_p7, %p1938_p11 }
  0x5b   : > { %p1941_p10 = pnand %p1940_p9, %p1934_p5 }
  0x5d   : > { %1944 = shalt.err (!%p1941_p10)
}
  0x5e   : > { %1730 = dma.hbm_to_vmem [thread:$0]  (!%p2244_p1), %s327_s1, 2048, %s329_s8, %s317_s2, %s2694_s3, %s2694_s3, %s2693_s25  }
  0x5f   : > { %s2696_s24 = sshll.u32 %s2242_s16, 1  ;;  %p2697_p13 = pmov %p2695_p3 }
  0x60   : > { %s362_s27 = scalar_lea.vmem [#allocation7], %s2696_s24  ;;  %s2099_s23 = smov [#allocation7]  }
  0x61   : > { %s371_s21 = sshll.u32 %s362_s27, 4  ;;  %s1963_s12 = sshll.u32 %s2099_s23, 4  ;;  %s372_s21 = int_to_ptr.vmem [resolvable:$true] %s371_s21  ;;  %s1964_s12 = int_to_ptr.vmem [resolvable:$false] %s1963_s12 }
  0x62   : > { %s1958_s22 = scalar_lea.vmem %s372_s21, 32  ;;  %s1965_s20 = scalar_lea.vmem %s1964_s12, 64 }
  0x63   : > { %p1959_p0 = scmp.ne.s32.totalorder %s372_s21, %s1958_s22  ;;  %p1966_p3 = scmp.lt.s32.totalorder %s372_s21, %s1964_s12 }
  0x64   : > { %p1967_p2 = scmp.lt.s32.totalorder %s1965_s20, %s1958_s22 }
  0x65   : > { %p1961_p12 = pnand %p1959_p0, %p2697_p13 }
  0x66   : > { %p1968_p5 = por %p1967_p2, %p1966_p3 }
  0x67   : > { %p1962_p6 = pneg %p1961_p12 }
  0x69   : > { %p1969_p11 = pnand %p1968_p5, %p1962_p6 }
  0x6b   : > { %1972 = shalt.err (!%p1969_p11)
}
  0x6c   : > { %1736 = dma.hbm_to_vmem [thread:$0]  (!%p2244_p1), %s2262_s7, 32, %s372_s21, %s2264_s26  }
  0x6d   : > { %380 = sbr.rel (%p2199_p8) target bundleno = 863 (0x35f), region = 48  ;;  %s2311_s1 = sand.u32 (!%p2199_p8), 1, %s2075_s28  }
  0x6e   : > { %s1476_s2 = sshll.u32 (!%p2199_p8), %s2311_s1, 7  ;;  %s383_s16 = scalar_lea.sflag (!%p2199_p8), [#allocation3], %s2311_s1 }
  0x6f   : > { %s2315_s25 = scalar_lea.vmem (!%p2199_p8), [#allocation2], %s1476_s2 }
  0x72   : > { %2050 = dma.done.wait (%p2189_p4), %s383_s16, 2048  }
  0x73   : > { %2052 = vsyncadd (%p2189_p4), %s383_s16, 4294965248  ;;  %s391_s7 = sand.u32 1, %s2180_s11   ;;  %s1477_s15 = sshll.u32 %s2311_s1, 1 }
  0x74   : > { %s392_s26 = scalar_lea.sflag [#allocation6], %s391_s7  ;;  %s2323_s17 = scalar_lea.vmem [#allocation5], %s1477_s15 }
  0x75   : > { %2054 = dma.done.wait (%p2189_p4), %s392_s26, 64  }
  0x76   : > { %2056 = vsyncadd (%p2189_p4), %s392_s26, 4294967232  ;;  %s2329_s3 = scalar_lea.vmem [#allocation7], %s1477_s15  ;;  %p2698_p1 = scmp.eq.s32.totalorder %s2180_s11, 0 }
  0x78   : > { %2058 = dma.done.wait (%p2698_p1), [#allocation9], 2048   ;;  %p2699_p8 = pmov %p2698_p1 }
  0x79   : > { %v1805_v0 = vld [vmem:[#allocation8 + $0x38] sm:$0xff]   ;;  %v1806_v1 = vld [vmem:[#allocation8 + $0x30] sm:$0xff]   ;;  %v1807_v2 = vld [vmem:[#allocation8 + $0x28] sm:$0xff]   ;;  %s1481_s8 = sshll.u32 %s2311_s1, 8  ;;  %s2702_s24 = sld [smem:[#allocation22_spill]] }
  0x7a   : > { %2060 = vsyncadd (%p2699_p8), [#allocation9], 4294965248  ;;  %1606 = vmatprep.subr.bf16.mxu0 %v1805_v0  ;;  %v1808_v3 = vld [vmem:[#allocation8 + $0x20] sm:$0xff]   ;;  %v1813_v4 = vld [vmem:[%s2315_s25] sm:$0xff]   ;;  %s2405_s19 = scalar_lea.vmem [#allocation11], %s1481_s8  ;;  %s1534_s27 = sshll.u32 %s2083_s30, 12 }
  0x7b   : > { %1607 = vmatpush3.bf16.msra.mxu0 %v1805_v0  ;;  %1622 = vmatprep.mubr.bf16.mxu0 %v1813_v4  ;;  %v1809_v5 = vld [vmem:[#allocation8 + $0x18] sm:$0xff]   ;;  %v1810_v6 = vld [vmem:[#allocation8 + $0x10] sm:$0xff]   ;;  %v1811_v7 = vld [vmem:[#allocation8 + $0x8] sm:$0xff]   ;;  %s1265_s21 = sshll.u32 %s2405_s19, 4  ;;  %s2703_s12 = sld [smem:[#allocation27_spill]]  ;;  %s2563_s21 = int_to_ptr.vmem [resolvable:$true] %s1265_s21 }
  0x7c   : > { %1608 = vmatprep.subr.bf16.mxu0 %v1806_v1  ;;  %v1812_v8 = vld [vmem:[#allocation8] sm:$0xff]   ;;  %v1829_v9 = vld [vmem:[#allocation10 + $0x38] sm:$0xff]   ;;  %v1830_v10 = vld [vmem:[#allocation10 + $0x30] sm:$0xff]   ;;  %s1246_s2 = scalar_lea.sflag [#allocation4], %s2311_s1  ;;  %s1973_s16 = scalar_lea.vmem %s2563_s21, 4096 }
  0x7d   : > { %1654 = vmatprep.subr.bf16.mxu1 %v1829_v9  ;;  %v1814_v11 = vld [vmem:[%s2315_s25 + $0x8] sm:$0xff]   ;;  %v1831_v12 = vld [vmem:[#allocation10 + $0x28] sm:$0xff]   ;;  %v1833_v15 = vld [vmem:[#allocation10 + $0x18] sm:$0xff]   ;;  %p1974_p4 = scmp.ne.s32.totalorder %s2563_s21, %s1973_s16 }
  0x7e   : > { %1655 = vmatpush3.bf16.msra.mxu1 %v1829_v9  ;;  %v1815_v13 = vld [vmem:[%s2315_s25 + $0x10] sm:$0xff]   ;;  %v1832_v14 = vld [vmem:[#allocation10 + $0x20] sm:$0xff]   ;;  %v1816_v16 = vld [vmem:[%s2315_s25 + $0x18] sm:$0xff]  }
  0x7f   : > { %1609 = vmatpush3.bf16.msra.mxu0 %v1806_v1  ;;  %1656 = vmatprep.subr.bf16.mxu1 %v1830_v10  ;;  %v1817_v17 = vld [vmem:[%s2315_s25 + $0x20] sm:$0xff]   ;;  %v1818_v18 = vld [vmem:[%s2315_s25 + $0x28] sm:$0xff]   ;;  %v1819_v19 = vld [vmem:[%s2315_s25 + $0x30] sm:$0xff]   ;;  %p2704_p7 = scmp.ne.s32.totalorder %s2702_s24, 0 }
  0x80   : > { %1610 = vmatprep.subr.bf16.mxu0 %v1807_v2  ;;  %v1820_v20 = vld [vmem:[%s2315_s25 + $0x38] sm:$0xff]   ;;  %v1821_v21 = vld [vmem:[%s2315_s25 + $0x40] sm:$0xff]   ;;  %v1822_v22 = vld [vmem:[%s2315_s25 + $0x48] sm:$0xff]  }
  0x81   : > { %v1823_v23 = vld [vmem:[%s2315_s25 + $0x50] sm:$0xff]   ;;  %v1824_v24 = vld [vmem:[%s2315_s25 + $0x58] sm:$0xff]   ;;  %v1825_v25 = vld [vmem:[%s2315_s25 + $0x60] sm:$0xff]   ;;  %s2561_s20 = scalar_lea.hbm %s2703_s12, %s1534_s27  ;;  %p1975_p9 = pnand %p1974_p4, %p2704_p7 }
  0x82   : > { %1657 = vmatpush3.bf16.msra.mxu1 %v1830_v10  ;;  %v1826_v26 = vld [vmem:[%s2315_s25 + $0x68] sm:$0xff]   ;;  %v1827_v27 = vld [vmem:[%s2315_s25 + $0x70] sm:$0xff]   ;;  %v1828_v28 = vld [vmem:[%s2315_s25 + $0x78] sm:$0xff]   ;;  %s2100_s25 = smov [#allocation11]  }
  0x83   : > { %1611 = vmatpush3.bf16.msra.mxu0 %v1807_v2  ;;  %1658 = vmatprep.subr.bf16.mxu1 %v1831_v12  ;;  %v1834_v29 = vld [vmem:[#allocation10 + $0x10] sm:$0xff]   ;;  %v1835_v30 = vld [vmem:[#allocation10 + $0x8] sm:$0xff]   ;;  %v1836_v31 = vld [vmem:[#allocation10] sm:$0xff]   ;;  %p1976_p10 = pneg %p1975_p9  ;;  %s1977_s7 = sshll.u32 %s2100_s25, 4  ;;  %s1978_s7 = int_to_ptr.vmem [resolvable:$false] %s1977_s7 }
  0x84   : > { %1612 = vmatprep.subr.bf16.mxu0 %v1808_v3  ;;  %v2354_v34 = vld [vmem:[%s2651_s4] ss:$0 sm:$0xff]  ;;  %s1979_s15 = scalar_lea.vmem %s1978_s7, 8192  ;;  %p1980_p0 = scmp.lt.s32.totalorder %s2563_s21, %s1978_s7 }
  0x85   : > { %p1981_p13 = scmp.lt.s32.totalorder %s1979_s15, %s1973_s16 }
  0x86   : > { %1659 = vmatpush3.bf16.msra.mxu1 %v1831_v12 }
  0x87   : > { %1613 = vmatpush3.bf16.msra.mxu0 %v1808_v3  ;;  %1660 = vmatprep.subr.bf16.mxu1 %v1832_v14  ;;  %p1982_p12 = por %p1981_p13, %p1980_p0 }
  0x88   : > { %1614 = vmatprep.subr.bf16.mxu0 %v1809_v5 }
  0x89   : > { %p1983_p6 = pnand %p1982_p12, %p1976_p10 }
  0x8a   : > { %1661 = vmatpush3.bf16.msra.mxu1 %v1832_v14 }
  0x8b   : > { %1615 = vmatpush3.bf16.msra.mxu0 %v1809_v5  ;;  %1662 = vmatprep.subr.bf16.mxu1 %v1833_v15 }
  0x8c   : > { %1616 = vmatprep.subr.bf16.mxu0 %v1810_v6 }
  0x8e   : > { %1663 = vmatpush3.bf16.msra.mxu1 %v1833_v15 }
  0x8f   : > { %1617 = vmatpush3.bf16.msra.mxu0 %v1810_v6  ;;  %1664 = vmatprep.subr.bf16.mxu1 %v1834_v29 }
  0x90   : > { %1618 = vmatprep.subr.bf16.mxu0 %v1811_v7 }
  0x92   : > { %1665 = vmatpush3.bf16.msra.mxu1 %v1834_v29 }
  0x93   : > { %1619 = vmatpush3.bf16.msra.mxu0 %v1811_v7  ;;  %1666 = vmatprep.subr.bf16.mxu1 %v1835_v30 }
  0x94   : > { %1620 = vmatprep.subr.bf16.mxu0 %v1812_v8 }
  0x96   : > { %1667 = vmatpush3.bf16.msra.mxu1 %v1835_v30 }
  0x97   : > { %1621 = vmatpush3.bf16.msra.mxu0 %v1812_v8  ;;  %1668 = vmatprep.subr.bf16.mxu1 %v1836_v31 }
  0x9a   : > { %1623 = vmatmul.mubr.bf16.vlgmr.msra.gmra.mxu0 %v1814_v11  ;;  %1669 = vmatpush3.bf16.msra.mxu1 %v1836_v31 }
  0x9b   : > { %1626 = vmatprep.mubr.bf16.mxu0 %v1815_v13 }
  0xa2   : > { %1627 = vmatmul.mubr.bf16.gmra.mxu0 %v1816_v16 }
  0xa3   : > { %1630 = vmatprep.mubr.bf16.mxu0 %v1817_v17 }
  0xaa   : > { %1631 = vmatmul.mubr.bf16.gmra.mxu0 %v1818_v18 }
  0xab   : > { %1634 = vmatprep.mubr.bf16.mxu0 %v1819_v19 }
  0xb2   : > { %1635 = vmatmul.mubr.bf16.gmra.mxu0 %v1820_v20 }
  0xb3   : > { %1638 = vmatprep.mubr.bf16.mxu0 %v1821_v21 }
  0xba   : > { %1639 = vmatmul.mubr.bf16.gmra.mxu0 %v1822_v22 }
  0xbb   : > { %1642 = vmatprep.mubr.bf16.mxu0 %v1823_v23 }
  0xc2   : > { %1643 = vmatmul.mubr.bf16.gmra.mxu0 %v1824_v24 }
  0xc3   : > { %1646 = vmatprep.mubr.bf16.mxu0 %v1825_v25 }
  0xca   : > { %1647 = vmatmul.mubr.bf16.gmra.mxu0 %v1826_v26 }
  0xcb   : > { %1650 = vmatprep.mubr.bf16.mxu0 %v1827_v27 }
  0xd2   : > { %1651 = vmatmul.mubr.bf16.gmra.mxu0 %v1828_v28 }
 0x15a   : > { %v1624_v32 = vpop.f32.mrf.mxu0 }
 0x15b   : > { %v712_v38 = vadd.f32 %v1624_v32, %v2354_v34 }
 0x15c   : > { %v703_v33 = vpop.f32.mrf.mxu0 }
 0x15d   : > { %v704_v36 = vadd.f32 %v2354_v34, %v703_v33  ;;  %v832_v45 = vmax.f32 %v712_v38, 0.0 }
 0x15e   : > { %v1625_v35 = vpop.f32.mrf.mxu0 }
 0x15f   : > { %v715_v37 = vadd.f32 %v1625_v35, %v2354_v34  ;;  %v830_v43 = vmax.f32 %v704_v36, 0.0 }
 0x160   : > { %v706_v39 = vpop.f32.mrf.mxu0 }
 0x161   : > { %v707_v40 = vadd.f32 %v2354_v34, %v706_v39  ;;  %v833_v41 = vmax.f32 %v715_v37, 0.0 }
 0x162   : > { %v1628_v42 = vpop.f32.mrf.mxu0 }
 0x163   : > { %v831_v44 = vmax.f32 %v707_v40, 0.0  ;;  %v863_v48 = vpack.c.bf16 %v833_v41, %v832_v45  ;;  %v728_v52 = vadd.f32 %v1628_v42, %v2354_v34 }
 0x164   : > { %v719_v46 = vpop.f32.mrf.mxu0 }
 0x165   : > { %v862_v47 = vpack.c.bf16 %v831_v44, %v830_v43  ;;  %v720_v50 = vadd.f32 %v2354_v34, %v719_v46  ;;  %v836_v59 = vmax.f32 %v728_v52, 0.0 }
 0x166   : > { %v1629_v49 = vpop.f32.mrf.mxu0 }
 0x167   : > { %v731_v51 = vadd.f32 %v1629_v49, %v2354_v34  ;;  %1670 = vmatprep.mubr.bf16.mxu1 %v862_v47  ;;  %v834_v57 = vmax.f32 %v720_v50, 0.0 }
 0x168   : > { %v722_v53 = vpop.f32.mrf.mxu0  ;;  %1671 = vmatmul.mubr.bf16.vlgmr.msra.gmra.mxu1 %v863_v48 }
 0x169   : > { %v723_v54 = vadd.f32 %v2354_v34, %v722_v53  ;;  %v837_v55 = vmax.f32 %v731_v51, 0.0 }
 0x16a   : > { %v1632_v56 = vpop.f32.mrf.mxu0 }
 0x16b   : > { %v835_v58 = vmax.f32 %v723_v54, 0.0  ;;  %v865_v62 = vpack.c.bf16 %v837_v55, %v836_v59  ;;  %v744_v2 = vadd.f32 %v1632_v56, %v2354_v34 }
 0x16c   : > { %v735_v60 = vpop.f32.mrf.mxu0 }
 0x16d   : > { %v864_v61 = vpack.c.bf16 %v835_v58, %v834_v57  ;;  %v736_v0 = vadd.f32 %v2354_v34, %v735_v60  ;;  %v840_v9 = vmax.f32 %v744_v2, 0.0 }
 0x16e   : > { %v1633_v63 = vpop.f32.mrf.mxu0 }
 0x16f   : > { %v747_v1 = vadd.f32 %v1633_v63, %v2354_v34  ;;  %1674 = vmatprep.mubr.bf16.mxu1 %v864_v61  ;;  %v838_v7 = vmax.f32 %v736_v0, 0.0 }
 0x170   : > { %v738_v3 = vpop.f32.mrf.mxu0  ;;  %1675 = vmatmul.mubr.bf16.gmra.mxu1 %v865_v62 }
 0x171   : > { %v739_v4 = vadd.f32 %v2354_v34, %v738_v3  ;;  %v841_v5 = vmax.f32 %v747_v1, 0.0 }
 0x172   : > { %v1636_v6 = vpop.f32.mrf.mxu0 }
 0x173   : > { %v839_v8 = vmax.f32 %v739_v4, 0.0  ;;  %v867_v12 = vpack.c.bf16 %v841_v5, %v840_v9  ;;  %v760_v16 = vadd.f32 %v1636_v6, %v2354_v34 }
 0x174   : > { %v751_v10 = vpop.f32.mrf.mxu0 }
 0x175   : > { %v866_v11 = vpack.c.bf16 %v839_v8, %v838_v7  ;;  %v752_v14 = vadd.f32 %v2354_v34, %v751_v10  ;;  %v844_v23 = vmax.f32 %v760_v16, 0.0 }
 0x176   : > { %v1637_v13 = vpop.f32.mrf.mxu0 }
 0x177   : > { %v763_v15 = vadd.f32 %v1637_v13, %v2354_v34  ;;  %1678 = vmatprep.mubr.bf16.mxu1 %v866_v11  ;;  %v842_v21 = vmax.f32 %v752_v14, 0.0 }
 0x178   : > { %v754_v17 = vpop.f32.mrf.mxu0  ;;  %1679 = vmatmul.mubr.bf16.gmra.mxu1 %v867_v12 }
 0x179   : > { %v755_v18 = vadd.f32 %v2354_v34, %v754_v17  ;;  %v845_v19 = vmax.f32 %v763_v15, 0.0 }
 0x17a   : > { %v1640_v20 = vpop.f32.mrf.mxu0 }
 0x17b   : > { %v843_v22 = vmax.f32 %v755_v18, 0.0  ;;  %v869_v26 = vpack.c.bf16 %v845_v19, %v844_v23  ;;  %v776_v30 = vadd.f32 %v1640_v20, %v2354_v34  ;;  %v1149_v18 = vlaneseq  ;;  %v1164_v23 = vld [vmem:[%s2329_s3] sm:$0x3] }
 0x17c   : > { %v767_v24 = vpop.f32.mrf.mxu0 }
 0x17d   : > { %v868_v25 = vpack.c.bf16 %v843_v22, %v842_v21  ;;  %v768_v28 = vadd.f32 %v2354_v34, %v767_v24  ;;  %v848_v38 = vmax.f32 %v776_v30, 0.0  ;;  %v1150_v19 = vshrl.u32 %v1149_v18, 7  ;;  %v1148_v21 = vld [vmem:[%s2323_s17] sm:$0x3] }
 0x17e   : > { %v1641_v27 = vpop.f32.mrf.mxu0  ;;  %v2400_v30 = vld [vmem:[%s2653_s6] ss:$0 sm:$0xff] }
 0x17f   : > { %v779_v29 = vadd.f32 %v1641_v27, %v2354_v34  ;;  %1682 = vmatprep.mubr.bf16.mxu1 %v868_v25  ;;  %v846_v36 = vmax.f32 %v768_v28, 0.0  ;;  %v1158_v20 = vsub.s32 1, %v1150_v19  ;;  %v1154_v22 = vsub.s32 0, %v1150_v19 }
 0x180   : > { %v770_v31 = vpop.f32.mrf.mxu0  ;;  %1683 = vmatmul.mubr.bf16.gmra.mxu1 %v869_v26  ;;  %v1151_v24 = vadd.s32 8, %v1150_v19 }
 0x181   : > { %v771_v32 = vadd.f32 %v2354_v34, %v770_v31  ;;  %v849_v33 = vmax.f32 %v779_v29, 0.0  ;;  %v1159_v25 = vrot.slane %v1148_v21, %v1158_v20  ;;  %v1173_v26 = vrot.slane %v1164_v23, %v1158_v20 }
 0x182   : > { %v1644_v35 = vpop.f32.mrf.mxu0  ;;  %v1155_v27 = vrot.slane %v1148_v21, %v1154_v22 }
 0x183   : > { %v847_v37 = vmax.f32 %v771_v32, 0.0  ;;  %v871_v41 = vpack.c.bf16 %v849_v33, %v848_v38  ;;  %v792_v45 = vadd.f32 %v1644_v35, %v2354_v34  ;;  %vm1161_vm0 = vcmp.eq.s32.totalorder %v1150_v19, %v1159_v25 }
 0x184   : > { %v783_v39 = vpop.f32.mrf.mxu0  ;;  %vm1163_vm1 = vcmp.eq.s32.totalorder %v1151_v24, %v1159_v25  ;;  %v1518_v28 = vpack.c.bf16 %v1173_v26, %v1173_v26  ;;  %vm1162_vm2 = vcmp.eq.s32.totalorder %v1151_v24, %v1155_v27  ;;  %vm1160_vm4 = vcmp.eq.s32.totalorder %v1150_v19, %v1155_v27 }
 0x185   : > { %v870_v40 = vpack.c.bf16 %v847_v37, %v846_v36  ;;  %v784_v43 = vadd.f32 %v2354_v34, %v783_v39  ;;  %v852_v52 = vmax.f32 %v792_v45, 0.0  ;;  %vm1517_vm3 = vmpackc.low %vm1163_vm1, %vm1161_vm0 }
 0x186   : > { %v1645_v42 = vpop.f32.mrf.mxu0  ;;  %1519 = vmatprep.mubr.msk.bf16.mxu0 %vm1517_vm3, %v1518_v28  ;;  %vm2392_vm5 = vmpackc.low %vm1162_vm2, %vm1160_vm4 }
 0x187   : > { %v795_v44 = vadd.f32 %v1645_v42, %v2354_v34  ;;  %1686 = vmatprep.mubr.bf16.mxu1 %v870_v40  ;;  %v850_v50 = vmax.f32 %v784_v43, 0.0 }
 0x188   : > { %v786_v46 = vpop.f32.mrf.mxu0  ;;  %1687 = vmatmul.mubr.bf16.gmra.mxu1 %v871_v41 }
 0x189   : > { %v787_v47 = vadd.f32 %v2354_v34, %v786_v46  ;;  %v853_v48 = vmax.f32 %v795_v44, 0.0 }
 0x18a   : > { %v1648_v49 = vpop.f32.mrf.mxu0 }
 0x18b   : > { %v851_v51 = vmax.f32 %v787_v47, 0.0  ;;  %v873_v55 = vpack.c.bf16 %v853_v48, %v852_v52  ;;  %v808_v59 = vadd.f32 %v1648_v49, %v2354_v34 }
 0x18c   : > { %v799_v53 = vpop.f32.mrf.mxu0 }
 0x18d   : > { %v872_v54 = vpack.c.bf16 %v851_v51, %v850_v50  ;;  %v800_v57 = vadd.f32 %v2354_v34, %v799_v53  ;;  %v856_v2 = vmax.f32 %v808_v59, 0.0 }
 0x18e   : > { %v1649_v56 = vpop.f32.mrf.mxu0 }
 0x18f   : > { %v811_v58 = vadd.f32 %v1649_v56, %v2354_v34  ;;  %1690 = vmatprep.mubr.bf16.mxu1 %v872_v54  ;;  %v854_v0 = vmax.f32 %v800_v57, 0.0 }
 0x190   : > { %v802_v60 = vpop.f32.mrf.mxu0  ;;  %1691 = vmatmul.mubr.bf16.gmra.mxu1 %v873_v55 }
 0x191   : > { %v803_v61 = vadd.f32 %v2354_v34, %v802_v60  ;;  %v857_v62 = vmax.f32 %v811_v58, 0.0 }
 0x192   : > { %v1652_v63 = vpop.f32.mrf.mxu0 }
 0x193   : > { %v855_v1 = vmax.f32 %v803_v61, 0.0  ;;  %v875_v5 = vpack.c.bf16 %v857_v62, %v856_v2  ;;  %v824_v9 = vadd.f32 %v1652_v63, %v2354_v34 }
 0x194   : > { %v815_v3 = vpop.f32.mrf.mxu0 }
 0x195   : > { %v874_v4 = vpack.c.bf16 %v855_v1, %v854_v0  ;;  %v816_v7 = vadd.f32 %v2354_v34, %v815_v3  ;;  %v860_v15 = vmax.f32 %v824_v9, 0.0 }
 0x196   : > { %v1653_v6 = vpop.f32.mrf.mxu0 }
 0x197   : > { %v827_v8 = vadd.f32 %v1653_v6, %v2354_v34  ;;  %1694 = vmatprep.mubr.bf16.mxu1 %v874_v4  ;;  %v858_v13 = vmax.f32 %v816_v7, 0.0 }
 0x198   : > { %v818_v10 = vpop.f32.mrf.mxu0  ;;  %1695 = vmatmul.mubr.bf16.gmra.mxu1 %v875_v5 }
 0x199   : > { %v819_v11 = vadd.f32 %v2354_v34, %v818_v10  ;;  %v861_v12 = vmax.f32 %v827_v8, 0.0  ;;  %v2390_v34 = vrot.slane %v1164_v23, %v1154_v22 }
 0x19b   : > { %v859_v14 = vmax.f32 %v819_v11, 0.0  ;;  %v877_v17 = vpack.c.bf16 %v861_v12, %v860_v15 }
 0x19d   : > { %v876_v16 = vpack.c.bf16 %v859_v14, %v858_v13 }
 0x19f   : > { %1698 = vmatprep.mubr.bf16.mxu1 %v876_v16 }
 0x1a0   : > { %1699 = vmatmul.mubr.bf16.gmra.mxu1 %v877_v17 }
 0x228   : > { %v1672_v31 = vpop.f32.mrf.mxu1 }
 0x229   : > { %v2403_v32 = vadd.f32 %v1672_v31, %v2400_v30 }
 0x22a   : > { %v983_v33 = vpop.f32.mrf.mxu1 }
 0x22b   : > { %1112 = vst [vmem:[%s2405_s19 + $0x10] sm:$0xff] %v2403_v32  ;;  %v2410_v35 = vadd.f32 %v2400_v30, %v983_v33 }
 0x22c   : > { %v1673_v36 = vpop.f32.mrf.mxu1 }
 0x22d   : > { %1110 = vst [vmem:[%s2405_s19] sm:$0xff] %v2410_v35  ;;  %v2415_v37 = vadd.f32 %v1673_v36, %v2400_v30 }
 0x22e   : > { %v986_v38 = vpop.f32.mrf.mxu1 }
 0x22f   : > { %1113 = vst [vmem:[%s2405_s19 + $0x18] sm:$0xff] %v2415_v37  ;;  %v1185_v39 = vpack.c.bf16 %v2415_v37, %v2403_v32  ;;  %v2422_v40 = vadd.f32 %v2400_v30, %v986_v38 }
 0x230   : > { %v1676_v41 = vpop.f32.mrf.mxu1 }
 0x231   : > { %1111 = vst [vmem:[%s2405_s19 + $0x8] sm:$0xff] %v2422_v40  ;;  %v1184_v42 = vpack.c.bf16 %v2422_v40, %v2410_v35  ;;  %v2429_v43 = vadd.f32 %v1676_v41, %v2400_v30 }
 0x232   : > { %v999_v44 = vpop.f32.mrf.mxu1 }
 0x233   : > { %1116 = vst [vmem:[%s2405_s19 + $0x30] sm:$0xff] %v2429_v43  ;;  %v2434_v45 = vadd.f32 %v2400_v30, %v999_v44 }
 0x234   : > { %v1677_v46 = vpop.f32.mrf.mxu1 }
 0x235   : > { %1114 = vst [vmem:[%s2405_s19 + $0x20] sm:$0xff] %v2434_v45  ;;  %v2439_v47 = vadd.f32 %v1677_v46, %v2400_v30 }
 0x236   : > { %v1002_v48 = vpop.f32.mrf.mxu1 }
 0x237   : > { %1117 = vst [vmem:[%s2405_s19 + $0x38] sm:$0xff] %v2439_v47  ;;  %v1187_v49 = vpack.c.bf16 %v2439_v47, %v2429_v43  ;;  %v2446_v50 = vadd.f32 %v2400_v30, %v1002_v48  ;;  %v1521_v43 = vpack.c.bf16 %v2390_v34, %v2390_v34 }
 0x238   : > { %v1680_v51 = vpop.f32.mrf.mxu1 }
 0x239   : > { %1115 = vst [vmem:[%s2405_s19 + $0x28] sm:$0xff] %v2446_v50  ;;  %v1186_v52 = vpack.c.bf16 %v2446_v50, %v2434_v45  ;;  %v2453_v53 = vadd.f32 %v1680_v51, %v2400_v30 }
 0x23a   : > { %v1015_v54 = vpop.f32.mrf.mxu1 }
 0x23b   : > { %1120 = vst [vmem:[%s2405_s19 + $0x50] sm:$0xff] %v2453_v53  ;;  %v2458_v55 = vadd.f32 %v2400_v30, %v1015_v54 }
 0x23c   : > { %v1681_v56 = vpop.f32.mrf.mxu1 }
 0x23d   : > { %1118 = vst [vmem:[%s2405_s19 + $0x40] sm:$0xff] %v2458_v55  ;;  %v2463_v57 = vadd.f32 %v1681_v56, %v2400_v30 }
 0x23e   : > { %v1018_v58 = vpop.f32.mrf.mxu1 }
 0x23f   : > { %1121 = vst [vmem:[%s2405_s19 + $0x58] sm:$0xff] %v2463_v57  ;;  %v2468_v59 = vadd.f32 %v2400_v30, %v1018_v58 }
 0x240   : > { %v1684_v60 = vpop.f32.mrf.mxu1 }
 0x241   : > { %1119 = vst [vmem:[%s2405_s19 + $0x48] sm:$0xff] %v2468_v59  ;;  %v2473_v61 = vadd.f32 %v1684_v60, %v2400_v30  ;;  %v1189_v60 = vpack.c.bf16 %v2463_v57, %v2453_v53 }
 0x242   : > { %v1031_v62 = vpop.f32.mrf.mxu1 }
 0x243   : > { %1124 = vst [vmem:[%s2405_s19 + $0x70] sm:$0xff] %v2473_v61  ;;  %v2478_v63 = vadd.f32 %v2400_v30, %v1031_v62 }
 0x244   : > { %v1685_v0 = vpop.f32.mrf.mxu1 }
 0x245   : > { %1122 = vst [vmem:[%s2405_s19 + $0x60] sm:$0xff] %v2478_v63  ;;  %v1043_v1 = vadd.f32 %v1685_v0, %v2400_v30 }
 0x246   : > { %v1034_v2 = vpop.f32.mrf.mxu1 }
 0x247   : > { %1125 = vst [vmem:[%s2405_s19 + $0x78] sm:$0xff] %v1043_v1  ;;  %v1035_v3 = vadd.f32 %v2400_v30, %v1034_v2  ;;  %v1191_v51 = vpack.c.bf16 %v1043_v1, %v2473_v61 }
 0x248   : > { %v1688_v4 = vpop.f32.mrf.mxu1 }
 0x249   : > { %1123 = vst [vmem:[%s2405_s19 + $0x68] sm:$0xff] %v1035_v3  ;;  %v2487_v5 = vadd.f32 %v1688_v4, %v2400_v30  ;;  %v1190_v56 = vpack.c.bf16 %v1035_v3, %v2478_v63 }
 0x24a   : > { %v1047_v6 = vpop.f32.mrf.mxu1 }
 0x24b   : > { %1128 = vst [vmem:[%s2405_s19 + $0x90] sm:$0xff] %v2487_v5  ;;  %v2492_v7 = vadd.f32 %v2400_v30, %v1047_v6 }
 0x24c   : > { %v1689_v8 = vpop.f32.mrf.mxu1 }
 0x24d   : > { %1126 = vst [vmem:[%s2405_s19 + $0x80] sm:$0xff] %v2492_v7  ;;  %v2497_v9 = vadd.f32 %v1689_v8, %v2400_v30 }
 0x24e   : > { %v1050_v10 = vpop.f32.mrf.mxu1 }
 0x24f   : > { %1129 = vst [vmem:[%s2405_s19 + $0x98] sm:$0xff] %v2497_v9  ;;  %v2502_v11 = vadd.f32 %v2400_v30, %v1050_v10  ;;  %v1193_v53 = vpack.c.bf16 %v2497_v9, %v2487_v5 }
 0x250   : > { %v1692_v12 = vpop.f32.mrf.mxu1 }
 0x251   : > { %1127 = vst [vmem:[%s2405_s19 + $0x88] sm:$0xff] %v2502_v11  ;;  %v1072_v13 = vadd.f32 %v1692_v12, %v2400_v30 }
 0x252   : > { %v1063_v14 = vpop.f32.mrf.mxu1 }
 0x253   : > { %1132 = vst [vmem:[%s2405_s19 + $0xb0] sm:$0xff] %v1072_v13  ;;  %v1064_v15 = vadd.f32 %v2400_v30, %v1063_v14 }
 0x254   : > { %v1693_v16 = vpop.f32.mrf.mxu1 }
 0x255   : > { %1130 = vst [vmem:[%s2405_s19 + $0xa0] sm:$0xff] %v1064_v15  ;;  %v1075_v17 = vadd.f32 %v1693_v16, %v2400_v30 }
 0x256   : > { %v1066_v18 = vpop.f32.mrf.mxu1 }
 0x257   : > { %1133 = vst [vmem:[%s2405_s19 + $0xb8] sm:$0xff] %v1075_v17  ;;  %v1067_v19 = vadd.f32 %v2400_v30, %v1066_v18  ;;  %v1195_v61 = vpack.c.bf16 %v1075_v17, %v1072_v13 }
 0x258   : > { %v1696_v20 = vpop.f32.mrf.mxu1 }
 0x259   : > { %1131 = vst [vmem:[%s2405_s19 + $0xa8] sm:$0xff] %v1067_v19  ;;  %v1088_v21 = vadd.f32 %v1696_v20, %v2400_v30  ;;  %v1194_v0 = vpack.c.bf16 %v1067_v19, %v1064_v15 }
 0x25a   : > { %v1079_v22 = vpop.f32.mrf.mxu1 }
 0x25b   : > { %1136 = vst [vmem:[%s2405_s19 + $0xd0] sm:$0xff] %v1088_v21  ;;  %v1080_v23 = vadd.f32 %v2400_v30, %v1079_v22 }
 0x25c   : > { %v1697_v24 = vpop.f32.mrf.mxu1 }
 0x25d   : > { %1134 = vst [vmem:[%s2405_s19 + $0xc0] sm:$0xff] %v1080_v23  ;;  %v1091_v25 = vadd.f32 %v1697_v24, %v2400_v30 }
 0x25e   : > { %v1082_v26 = vpop.f32.mrf.mxu1 }
 0x25f   : > { %1137 = vst [vmem:[%s2405_s19 + $0xd8] sm:$0xff] %v1091_v25  ;;  %v1083_v27 = vadd.f32 %v2400_v30, %v1082_v26  ;;  %v1197_v58 = vpack.c.bf16 %v1091_v25, %v1088_v21 }
 0x260   : > { %v1700_v28 = vpop.f32.mrf.mxu1 }
 0x261   : > { %1135 = vst [vmem:[%s2405_s19 + $0xc8] sm:$0xff] %v1083_v27  ;;  %v1104_v31 = vadd.f32 %v1700_v28, %v2400_v30  ;;  %v1196_v62 = vpack.c.bf16 %v1083_v27, %v1080_v23 }
 0x262   : > { %v1095_v33 = vpop.f32.mrf.mxu1 }
 0x263   : > { %1140 = vst [vmem:[%s2405_s19 + $0xf0] sm:$0xff] %v1104_v31  ;;  %v1096_v36 = vadd.f32 %v2400_v30, %v1095_v33 }
 0x264   : > { %v1701_v38 = vpop.f32.mrf.mxu1 }
 0x265   : > { %1138 = vst [vmem:[%s2405_s19 + $0xe0] sm:$0xff] %v1096_v36  ;;  %v1107_v41 = vadd.f32 %v1701_v38, %v2400_v30 }
 0x266   : > { %v1098_v44 = vpop.f32.mrf.mxu1 }
 0x267   : > { %1141 = vst [vmem:[%s2405_s19 + $0xf8] sm:$0xff] %v1107_v41  ;;  %v1199_v46 = vpack.c.bf16 %v1107_v41, %v1104_v31  ;;  %v1099_v48 = vadd.f32 %v2400_v30, %v1098_v44  ;;  %v1188_v30 = vpack.c.bf16 %v2468_v59, %v2458_v55  ;;  %v1192_v55 = vpack.c.bf16 %v2502_v11, %v2492_v7 }
 0x269   : > { %1139 = vst [vmem:[%s2405_s19 + $0xe8] sm:$0xff] %v1099_v48  ;;  %v1198_v54 = vpack.c.bf16 %v1099_v48, %v1096_v36  ;;  %1584 = vmatprep.subr.bf16.mxu0 %v1199_v46 }
 0x26a   : > { %1585 = vmatpush3.bf16.msra.mxu0 %v1191_v51 }
 0x26b   : > { %1586 = vmatprep.subr.bf16.mxu0 %v1198_v54 }
 0x26e   : > { %1587 = vmatpush3.bf16.msra.mxu0 %v1190_v56 }
 0x26f   : > { %1588 = vmatprep.subr.bf16.mxu0 %v1197_v58 }
 0x272   : > { %1589 = vmatpush3.bf16.msra.mxu0 %v1189_v60 }
 0x273   : > { %1590 = vmatprep.subr.bf16.mxu0 %v1196_v62 }
 0x276   : > { %1591 = vmatpush3.bf16.msra.mxu0 %v1188_v30 }
 0x277   : > { %1592 = vmatprep.subr.bf16.mxu0 %v1195_v61 }
 0x27a   : > { %1593 = vmatpush3.bf16.msra.mxu0 %v1187_v49 }
 0x27b   : > { %1594 = vmatprep.subr.bf16.mxu0 %v1194_v0 }
 0x27e   : > { %1595 = vmatpush3.bf16.msra.mxu0 %v1186_v52 }
 0x27f   : > { %1596 = vmatprep.subr.bf16.mxu0 %v1193_v53 }
 0x282   : > { %1597 = vmatpush3.bf16.msra.mxu0 %v1185_v39 }
 0x283   : > { %1598 = vmatprep.subr.bf16.mxu0 %v1192_v55 }
 0x286   : > { %1599 = vmatpush3.bf16.msra.mxu0 %v1184_v42 }
 0x289   : > { %1522 = vmatmul.mubr.msk.bf16.vlgmr.msra.gmra.mxu0 %vm2392_vm5, %v1521_v43 }
 0x28a   : > { %1986 = shalt.err (!%p1983_p6)
}
 0x28b   : > { %s1987_s26 = scalar_lea.hbm %s2561_s20, 4096  ;;  %s1991_s11 = scalar_lea.hbm %s2703_s12, 8192 }
 0x28c   : > { %p1988_p3 = scmp.ne.s32.totalorder %s2561_s20, %s1987_s26  ;;  %p1992_p11 = scmp.lt.s32.totalorder %s2561_s20, %s2703_s12 }
 0x28d   : > { %p1993_p1 = scmp.lt.s32.totalorder %s1991_s11, %s1987_s26 }
 0x28e   : > { %p1989_p2 = pnand %p1988_p3, %p2704_p7 }
 0x28f   : > { %p1994_p8 = por %p1993_p1, %p1992_p11 }
 0x290   : > { %p1990_p5 = pneg %p1989_p2 }
 0x292   : > { %p1995_p4 = pnand %p1994_p8, %p1990_p5 }
 0x294   : > { %1998 = shalt.err (!%p1995_p4)
}
 0x295   : > { %s2101_s18 = smov 128   ;;  %s2102_s14 = smov 8  }
 0x296   : > { %1716 = dma.vmem_to_hbm [thread:$0]  (%p2704_p7), %s2563_s21, 4096, %s2561_s20, %s1246_s2, %s2101_s18, %s2101_s18, %s2102_s14  }
 0x297   : > { %s1482_s19 = sshll.u32 %s2311_s1, 4  ;;  %s1535_s27 = sshll.u32 %s2083_s30, 8 }
 0x298   : > { %s459_s22 = scalar_lea.vmem [#allocation12], %s1482_s19  ;;  %s2705_s7 = sld [smem:[#allocation28_spill]] }
 0x299   : > { %s1281_s23 = sshll.u32 %s459_s22, 4  ;;  %s1251_s21 = scalar_lea.sflag [#allocation13], %s2311_s1  ;;  %s2598_s23 = int_to_ptr.vmem [resolvable:$true] %s1281_s23 }
 0x29a   : > { %s1999_s20 = scalar_lea.vmem %s2598_s23, 256  ;;  %s2103_s30 = smov [#allocation12]  }
 0x29b   : > { %p2000_p9 = scmp.ne.s32.totalorder %s2598_s23, %s1999_s20  ;;  %s2003_s2 = sshll.u32 %s2103_s30, 4  ;;  %s2004_s2 = int_to_ptr.vmem [resolvable:$false] %s2003_s2 }
 0x29c   : > { %s2005_s26 = scalar_lea.vmem %s2004_s2, 512  ;;  %p2006_p13 = scmp.lt.s32.totalorder %s2598_s23, %s2004_s2 }
 0x29d   : > { %p2001_p10 = pnand %p2000_p9, %p2704_p7  ;;  %p2007_p12 = scmp.lt.s32.totalorder %s2005_s26, %s1999_s20 }
 0x29e   : > { %s2596_s15 = scalar_lea.hbm %s2705_s7, %s1535_s27 }
 0x29f   : > { %p2002_p0 = pneg %p2001_p10  ;;  %p2008_p6 = por %p2007_p12, %p2006_p13 }
 0x2a1   : > { %p2009_p3 = pnand %p2008_p6, %p2002_p0 }
 0x349   : > { %v1600_v34 = vpop.f32.mrf.mxu0 }
 0x34b   : > { %v1601_v29 = vpop.f32.mrf.mxu0 }
 0x34c   : > { %v1602_v32 = vadd.f32 %v1601_v29, %v1600_v34 }
 0x34d   : > { %v1603_v35 = vpop.f32.mrf.mxu0 }
 0x34e   : > { %1243 = vst [vmem:[%s459_s22] sm:$0xff] %v1602_v32 }
 0x34f   : > { %v1604_v37 = vpop.f32.mrf.mxu0 }
 0x350   : > { %v1605_v39 = vadd.f32 %v1604_v37, %v1603_v35 }
 0x352   : > { %1244 = vst [vmem:[%s459_s22 + $0x8] sm:$0xff] %v1605_v39 }
 0x353   : > { %2012 = shalt.err (!%p2009_p3)
}
 0x354   : > { %s2013_s17 = scalar_lea.hbm %s2596_s15, 256  ;;  %s2017_s11 = scalar_lea.hbm %s2705_s7, 512 }
 0x355   : > { %p2014_p2 = scmp.ne.s32.totalorder %s2596_s15, %s2013_s17  ;;  %p2018_p1 = scmp.lt.s32.totalorder %s2596_s15, %s2705_s7 }
 0x356   : > { %p2019_p8 = scmp.lt.s32.totalorder %s2017_s11, %s2013_s17 }
 0x357   : > { %p2015_p5 = pnand %p2014_p2, %p2704_p7 }
 0x358   : > { %p2020_p4 = por %p2019_p8, %p2018_p1 }
 0x359   : > { %p2016_p11 = pneg %p2015_p5 }
 0x35b   : > { %p2021_p9 = pnand %p2020_p4, %p2016_p11 }
 0x35d   : > { %2024 = shalt.err (!%p2021_p9)
}
 0x35e   : > { %1717 = dma.vmem_to_hbm [thread:$0]  (%p2704_p7), %s2598_s23, 256, %s2596_s15, %s1251_s21, %s2101_s18, %s2101_s18, %s2102_s14  }
 0x35f PF: > { %s2706_s19 = sld [smem:[#allocation19_spill]]  ;;  %p2709_p0 = scmp.ge.s32.totalorder %s2091_s10, 2 }
 0x360   : > { %s2707_s27 = sld [smem:[#allocation20_spill]] }
 0x365   : > { %s1296_s22 = sand.u32 1, %s2706_s19  }
 0x366   : > { %p2708_p10 = scmp.ne.s32.totalorder %s2707_s27, 0  ;;  %s1297_s16 = scalar_lea.sflag [#allocation4], %s1296_s22 }
 0x368   : > { %p1738_p13 = pnand %p2709_p0, %p2708_p10 }
 0x36a   : > { %p1739_p12 = pneg %p1738_p13 }
 0x36c   : > { %2062 = dma.done.wait (%p1739_p12), %s1297_s16, 4096  }
 0x36d   : > { %2064 = vsyncadd (%p1739_p12), %s1297_s16, 4294963200  ;;  %s1306_s25 = scalar_lea.sflag [#allocation13], %s1296_s22 }
 0x36e   : > { %2066 = dma.done.wait (%p1739_p12), %s1306_s25, 256  }
 0x36f   : > { %2068 = vsyncadd (%p1739_p12), %s1306_s25, 4294967040  ;;  %s32_s10 = sadd.s32 1, %s2091_s10   ;;  %s2710_s24 = sld [smem:[#allocation23_spill]] }
 0x370   : > { %p29_p6 = scmp.ge.s32.totalorder %s32_s10, 4   ;;  %s2711_s18 = sld [smem:[#allocation21_spill]] }
 0x371   : > { %s2712_s27 = smov %s2075_s28  ;;  %s2713_s28 = smov %s2079_s29 }
 0x372   : > { %s2715_s30 = smov %s2087_s9  ;;  %31 = sbr.rel (!%p29_p6) target bundleno = 17 (0x11), region = 146 }
 0x375   : > { %s2714_s29 = smov %s2710_s24 }
 0x376   : > { %s2716_s9 = smov %s2711_s18 }
 0x377   :  { %1311 = vsyncpa [#allocation3], 1 }
 0x378   :  { %1313 = vsyncpa [#allocation3 + $0x1], 1 }
 0x379   :  { %1314 = vsyncpa [#allocation6], 1 }
 0x37a   :  { %1316 = vsyncpa [#allocation6 + $0x1], 1 }
 0x37b   :  { %1317 = vsyncpa [#allocation9], 1 }
 0x37c   :  { %1318 = vsyncpa [#allocation4], 1 }
 0x37d   :  { %1320 = vsyncpa [#allocation4 + $0x1], 1 }
 0x37e   :  { %1321 = vsyncpa [#allocation13], 1 }
 0x37f   :  { %1323 = vsyncpa [#allocation13 + $0x1], 1 }

</bundles_post_ra>
